<compile_context>
chip_gen: v6e
topology: v6e:2x2x1
jax: 0.10.0
libtpu: 0.0.40
codegen_flags: <defaults>
</compile_context>

<pallas_src>
import functools

import jax
import jax.numpy as jnp
from jax import lax
from jax.experimental import pallas as pl
from jax.experimental.pallas import tpu as pltpu

EPS = 0.2
MAT_DIFF_LOSS_SCALE = 0.001

_TB_MAX = 128     # batch tile cap (see VMEM note above)
_OUT_SUB = 8      # sublane extent of the per-block partial tile
_OUT_LANE = 128   # lane extent of the per-block partial tile


def _pick_batch_tile(batch):
    """Full batch when tiny; otherwise a multiple of 8 giving >=2 grid steps, capped."""
    if batch <= 8:
        return batch
    half = -(-batch // 2)                      # cdiv(batch, 2) -> >=2 grid steps
    return max(8, min(_TB_MAX, ((half + 7) // 8) * 8))


def _pick_chunk(tb, d):
    """Samples packed per MXU pass: aim for g*D ~ 256 lanes, g | tb, g <= 8."""
    g = max(1, min(tb, 256 // max(d, 1), 8))
    while tb % g:
        g -= 1
    return g


def _loss_partial_kernel(pred_ref, target_ref, trans_ref, out_ref, *, batch, chunk):
    """One batch tile -> (8,128) partial tile: [0,0]=sum CE_i, [0,1]=sum ||A_i A_i^T - I||_F."""
    pred = pred_ref[...]                 # (TB, C)   f32
    target = target_ref[...]             # (TB, 1)   i32
    # trans_ref is the 2-D slab (TB*D, D); sample i occupies rows [i*D, (i+1)*D).

    tb, n_class = pred.shape
    d = trans_ref.shape[1]
    g = chunk                            # samples packed per MXU pass
    gd = g * d
    nc = tb // g                         # chunks per batch tile (g | tb by construction)

    row0 = pl.program_id(0) * tb
    # Valid-row mask for the (possibly padded) last batch tile.
    valid = (row0 + lax.broadcasted_iota(jnp.int32, (tb, 1), 0)) < batch    # (TB, 1)

    # ---- label-smoothed cross entropy (closed form, no materialized one_hot) ----
    # loss_i = -[(1 - eps - eps/(C-1)) * logp_target_i + (eps/(C-1)) * sum_c logp_ic]
    m = jnp.max(pred, axis=1, keepdims=True)
    shifted = pred - m
    lse = jnp.log(jnp.sum(jnp.exp(shifted), axis=1, keepdims=True))
    log_prb = shifted - lse                                                 # (TB, C)

    cls_idx = lax.broadcasted_iota(jnp.int32, (tb, n_class), 1)
    logp_t = jnp.sum(jnp.where(cls_idx == target, log_prb, 0.0),
                     axis=1, keepdims=True)                                 # (TB, 1)
    sum_logp = jnp.sum(log_prb, axis=1, keepdims=True)                      # (TB, 1)

    coef_u = EPS / (n_class - 1)          # assumes C > 1 (same as PyTorch module)
    coef_t = 1.0 - EPS - coef_u
    ce = -(coef_t * logp_t + coef_u * sum_logp)                             # (TB, 1)
    ce_sum = jnp.sum(jnp.where(valid, ce, 0.0))

    # ---- feature-transform regularizer: ||A A^T - I||_F per sample (fused, packed) ----
    # ||G - I||_F^2 = ||G||_F^2 - 2 tr(G) + D,  tr(G) taken from the Gram diagonal.
    eye_d = (lax.broadcasted_iota(jnp.int32, (d, d), 0)
             == lax.broadcasted_iota(jnp.int32, (d, d), 1))                 # hoisted

    def chunk_body(j, acc):
        start = pl.multiple_of(j * gd, gd)
        a = trans_ref[pl.ds(start, gd), :].astype(jnp.bfloat16)             # (g*D, D)
        # One MXU pass for g packed samples; f32 accumulation.
        gram = lax.dot_general(a, a, (((1,), (1,)), ((), ())),
                               preferred_element_type=jnp.float32)          # (g*D, g*D)
        csum = jnp.float32(0.0)
        for s in range(g):                      # static unroll, g <= 8
            blk = gram[s * d:(s + 1) * d, s * d:(s + 1) * d]                # A_s A_s^T
            gg_s = jnp.sum(blk * blk)
            tr_s = jnp.sum(jnp.where(eye_d, blk, 0.0))
            fro_s = jnp.sqrt(jnp.maximum(gg_s - 2.0 * tr_s + jnp.float32(d), 0.0))
            ok = (row0 + j * g + s) < batch     # mask padded samples (select, not mul)
            csum = csum + jnp.where(ok, fro_s, 0.0)
        return acc + csum

    fro_sum = lax.fori_loop(0, nc, chunk_body, jnp.float32(0.0))

    # Lane-aligned partial-sum tile (unmasked full-tile store): [0,0]=ce, [0,1]=fro.
    col = lax.broadcasted_iota(jnp.int32, (_OUT_SUB, _OUT_LANE), 1)
    out_ref[...] = (jnp.where(col == 0, ce_sum, 0.0)
                    + jnp.where(col == 1, fro_sum, 0.0))


def get_loss_pallas(pred, target, trans_feat):
    """pred: (B, C) f32, target: (B,) int, trans_feat: (B, D, D) f32 -> scalar f32."""
    pred = pred.astype(jnp.float32)
    trans_feat = trans_feat.astype(jnp.float32)
    target2d = target.astype(jnp.int32).reshape(-1, 1)      # PyTorch target.view(-1, 1)

    batch, n_class = pred.shape
    d = trans_feat.shape[-1]
    trans2d = trans_feat.reshape(batch * d, d)               # (B*D, D) slab for row-slicing

    tb = _pick_batch_tile(batch)
    nb = pl.cdiv(batch, tb)
    g = _pick_chunk(tb, d)

    kernel = functools.partial(_loss_partial_kernel, batch=batch, chunk=g)

    cost = pl.CostEstimate(
        flops=int(2 * batch * g * d ** 3 + 8 * batch * n_class),
        transcendentals=int(batch * (n_class + 2)),
        bytes_accessed=int(4 * batch * (d * d + n_class + 1)
                           + nb * _OUT_SUB * _OUT_LANE * 4),
    )

    partials = pl.pallas_call(
        kernel,
        out_shape=jax.ShapeDtypeStruct((nb * _OUT_SUB, _OUT_LANE), jnp.float32),
        grid_spec=pltpu.PrefetchScalarGridSpec(
            num_scalar_prefetch=0,
            grid=(nb,),
            in_specs=[
                pl.BlockSpec((tb, n_class), lambda i: (i, 0)),   # full class dim
                pl.BlockSpec((tb, 1), lambda i: (i, 0)),
                pl.BlockSpec((tb * d, d), lambda i: (i, 0)),     # tb samples' matrices
            ],
            out_specs=pl.BlockSpec((_OUT_SUB, _OUT_LANE), lambda i: (i, 0)),
        ),
        compiler_params=pltpu.CompilerParams(
            dimension_semantics=("parallel",)),   # per-block partials -> megacore-friendly
        cost_estimate=cost,
    )(pred, target2d, trans2d)

    # Trivial final reduction in JAX (keeps the grid axis purely parallel).
    partials = partials.reshape(nb, _OUT_SUB, _OUT_LANE)
    ce_total = jnp.sum(partials[:, 0, 0])
    fro_total = jnp.sum(partials[:, 0, 1])
    return ce_total / batch + (fro_total / batch) * MAT_DIFF_LOSS_SCALE


def _reference_loss(pred, target, trans_feat):
    """Pure-JAX f32 reference mirroring the PyTorch module (for sanity checking)."""
    n_class = pred.shape[1]
    one_hot = jax.nn.one_hot(target, n_class, dtype=jnp.float32)
    one_hot = one_hot * (1 - EPS) + (1 - one_hot) * EPS / (n_class - 1)
    log_prb = jax.nn.log_softmax(pred, axis=1)
    loss = -jnp.mean(jnp.sum(one_hot * log_prb, axis=1))
    d = trans_feat.shape[1]
    I = jnp.eye(d, dtype=jnp.float32)[None]
    diff = jnp.einsum('bij,bkj->bik', trans_feat, trans_feat) - I
    mat_diff_loss = jnp.mean(jnp.sqrt(jnp.sum(diff * diff, axis=(1, 2))))
    return loss + mat_diff_loss * MAT_DIFF_LOSS_SCALE


if __name__ == "__main__":
    key = jax.random.PRNGKey(0)
    k1, k2, k3 = jax.random.split(key, 3)

    B, C, D = 4, 8, 8   # batch, num classes, transform dim (small test shapes)
    pred = jax.random.normal(k1, (B, C), dtype=jnp.float32)
    target = jax.random.randint(k2, (B,), 0, C, dtype=jnp.int32)
    trans_feat = jax.random.normal(k3, (B, D, D), dtype=jnp.float32)

    total_loss = get_loss_pallas(pred, target, trans_feat)
    jax.block_until_ready(total_loss)

    ref = _reference_loss(pred, target, trans_feat)
    # Tolerance allows for the bf16 Gram matmul (regularizer term is scaled by 1e-3);
    # at these shapes the observed deviation is ~1e-5.
    assert jnp.allclose(total_loss, ref, atol=1e-3, rtol=1e-3), (total_loss, ref)

    print("KERNEL_OK")
</pallas_src>

<mosaic_0001>
module attributes {stable_mosaic.version = 11 : i64} {
  func.func @_loss_partial_kernel(%arg0: i32, %arg1: memref<4x8xf32, #tpu.memory_space<vmem>>, %arg2: memref<4x1xi32, #tpu.memory_space<vmem>>, %arg3: memref<32x8xf32, #tpu.memory_space<vmem>>, %arg4: memref<8x128xf32, #tpu.memory_space<vmem>>) attributes {dimension_semantics = [#tpu.dimension_semantics<parallel>], iteration_bounds = array<i64: 1>, scalar_prefetch = 0 : i64, scratch_operands = 0 : i64, tpu.core_type = #tpu.core_type<tc>, window_params = [{transform_indices = @transform_0, window_bounds = array<i64: 4, 8>}, {transform_indices = @transform_1, window_bounds = array<i64: 4, 1>}, {transform_indices = @transform_2, window_bounds = array<i64: 32, 8>}, {transform_indices = @transform_3, window_bounds = array<i64: 8, 128>}]} {
    %c0 = arith.constant 0 : index
    %c0_0 = arith.constant 0 : index
    %0 = vector.load %arg1[%c0, %c0_0] : memref<4x8xf32, #tpu.memory_space<vmem>>, vector<4x8xf32>
    %c0_1 = arith.constant 0 : index
    %c0_2 = arith.constant 0 : index
    %1 = vector.load %arg2[%c0_1, %c0_2] : memref<4x1xi32, #tpu.memory_space<vmem>>, vector<4x1xi32>
    %c4_i32 = arith.constant 4 : i32
    %2 = arith.muli %arg0, %c4_i32 : i32
    %3 = tpu.iota {dimensions = array<i32: 0>} : vector<4x1xi32>
    %4 = vector.broadcast %2 : i32 to vector<4x1xi32>
    %5 = arith.addi %4, %3 : vector<4x1xi32>
    %c4_i32_3 = arith.constant 4 : i32
    %6 = vector.broadcast %c4_i32_3 : i32 to vector<4x1xi32>
    %7 = arith.cmpi slt, %5, %6 : vector<4x1xi32>
    %cst = arith.constant dense<0xFF800000> : vector<4xf32>
    %8 = vector.multi_reduction <maximumf>, %0, %cst [1] : vector<4x8xf32> to vector<4xf32>
    %9 = vector.shape_cast %8 : vector<4xf32> to vector<4x1xf32>
    %10 = vector.broadcast %9 : vector<4x1xf32> to vector<4x8xf32>
    %11 = arith.subf %0, %10 : vector<4x8xf32>
    %12 = math.exp %11 : vector<4x8xf32>
    %cst_4 = arith.constant dense<0.000000e+00> : vector<4xf32>
    %13 = vector.multi_reduction <add>, %12, %cst_4 [1] : vector<4x8xf32> to vector<4xf32>
    %14 = vector.shape_cast %13 : vector<4xf32> to vector<4x1xf32>
    %15 = math.log %14 : vector<4x1xf32>
    %16 = vector.broadcast %15 : vector<4x1xf32> to vector<4x8xf32>
    %17 = arith.subf %11, %16 : vector<4x8xf32>
    %18 = tpu.iota {dimensions = array<i32: 1>} : vector<4x8xi32>
    %19 = vector.broadcast %1 : vector<4x1xi32> to vector<4x8xi32>
    %20 = arith.cmpi eq, %18, %19 : vector<4x8xi32>
    %cst_5 = arith.constant 0.000000e+00 : f32
    %21 = vector.broadcast %cst_5 : f32 to vector<4x8xf32>
    %22 = arith.select %20, %17, %21 : vector<4x8xi1>, vector<4x8xf32>
    %cst_6 = arith.constant dense<0.000000e+00> : vector<4xf32>
    %23 = vector.multi_reduction <add>, %22, %cst_6 [1] : vector<4x8xf32> to vector<4xf32>
    %24 = vector.shape_cast %23 : vector<4xf32> to vector<4x1xf32>
    %cst_7 = arith.constant dense<0.000000e+00> : vector<4xf32>
    %25 = vector.multi_reduction <add>, %17, %cst_7 [1] : vector<4x8xf32> to vector<4xf32>
    %26 = vector.shape_cast %25 : vector<4xf32> to vector<4x1xf32>
    %cst_8 = arith.constant 0.771428585 : f32
    %27 = vector.broadcast %cst_8 : f32 to vector<4x1xf32>
    %28 = arith.mulf %27, %24 : vector<4x1xf32>
    %cst_9 = arith.constant 0.0285714287 : f32
    %29 = vector.broadcast %cst_9 : f32 to vector<4x1xf32>
    %30 = arith.mulf %29, %26 : vector<4x1xf32>
    %31 = arith.addf %28, %30 : vector<4x1xf32>
    %cst_10 = arith.constant 0.000000e+00 : f32
    %32 = vector.broadcast %cst_10 : f32 to vector<4x1xf32>
    %33 = arith.subf %32, %31 : vector<4x1xf32>
    %cst_11 = arith.constant 0.000000e+00 : f32
    %34 = vector.broadcast %cst_11 : f32 to vector<4x1xf32>
    %35 = arith.select %7, %33, %34 : vector<4x1xi1>, vector<4x1xf32>
    %36 = vector.shape_cast %35 : vector<4x1xf32> to vector<1x4x1xf32>
    %cst_12 = arith.constant dense<0.000000e+00> : vector<1xf32>
    %37 = vector.multi_reduction <add>, %36, %cst_12 [1, 2] : vector<1x4x1xf32> to vector<1xf32>
    %38 = vector.shape_cast %37 : vector<1xf32> to vector<1x1x1xf32>
    %39 = vector.extract %38[0, 0, 0] : f32 from vector<1x1x1xf32>
    %40 = tpu.iota {dimensions = array<i32: 0>} : vector<8x8xi32>
    %41 = tpu.iota {dimensions = array<i32: 1>} : vector<8x8xi32>
    %42 = arith.cmpi eq, %40, %41 : vector<8x8xi32>
    %cst_13 = arith.constant 0.000000e+00 : f32
    %c0_i32 = arith.constant 0 : i32
    %c32_i32 = arith.constant 32 : i32
    %43 = arith.muli %c0_i32, %c32_i32 : i32
    %44 = tpu.assume_multiple %43, 32 : i32
    %45 = arith.index_cast %44 : i32 to index
    %c0_14 = arith.constant 0 : index
    %46 = vector.load %arg3[%45, %c0_14] : memref<32x8xf32, #tpu.memory_space<vmem>>, vector<32x8xf32>
    %47 = arith.truncf %46 : vector<32x8xf32> to vector<32x8xbf16>
    %cst_15 = arith.constant dense<0.000000e+00> : vector<32x32xf32>
    %48 = tpu.matmul %47, %47, %cst_15 {dimension_numbers = #tpu.dot_dimension_numbers<[1], [1], [0], [0], [0, 0, 1, 0], [], []>} : vector<32x8xbf16>, vector<32x8xbf16>, vector<32x32xf32> -> vector<32x32xf32>
    %49 = vector.extract_strided_slice %48 {offsets = [0, 0], sizes = [8, 8], strides = [1, 1]} : vector<32x32xf32> to vector<8x8xf32>
    %50 = arith.mulf %49, %49 : vector<8x8xf32>
    %51 = vector.shape_cast %50 : vector<8x8xf32> to vector<1x8x8xf32>
    %cst_16 = arith.constant dense<0.000000e+00> : vector<1xf32>
    %52 = vector.multi_reduction <add>, %51, %cst_16 [1, 2] : vector<1x8x8xf32> to vector<1xf32>
    %53 = vector.shape_cast %52 : vector<1xf32> to vector<1x1x1xf32>
    %54 = vector.extract %53[0, 0, 0] : f32 from vector<1x1x1xf32>
    %cst_17 = arith.constant 0.000000e+00 : f32
    %55 = vector.broadcast %cst_17 : f32 to vector<8x8xf32>
    %56 = arith.select %42, %49, %55 : vector<8x8xi1>, vector<8x8xf32>
    %57 = vector.shape_cast %56 : vector<8x8xf32> to vector<1x8x8xf32>
    %cst_18 = arith.constant dense<0.000000e+00> : vector<1xf32>
    %58 = vector.multi_reduction <add>, %57, %cst_18 [1, 2] : vector<1x8x8xf32> to vector<1xf32>
    %59 = vector.shape_cast %58 : vector<1xf32> to vector<1x1x1xf32>
    %60 = vector.extract %59[0, 0, 0] : f32 from vector<1x1x1xf32>
    %cst_19 = arith.constant 2.000000e+00 : f32
    %61 = arith.mulf %cst_19, %60 : f32
    %62 = arith.subf %54, %61 : f32
    %cst_20 = arith.constant 8.000000e+00 : f32
    %63 = arith.addf %62, %cst_20 : f32
    %cst_21 = arith.constant 0.000000e+00 : f32
    %64 = arith.maximumf %63, %cst_21 : f32
    %65 = math.sqrt %64 : f32
    %c4_i32_22 = arith.constant 4 : i32
    %66 = arith.muli %c0_i32, %c4_i32_22 : i32
    %67 = arith.addi %2, %66 : i32
    %c0_i32_23 = arith.constant 0 : i32
    %68 = arith.addi %67, %c0_i32_23 : i32
    %c4_i32_24 = arith.constant 4 : i32
    %69 = arith.cmpi slt, %68, %c4_i32_24 : i32
    %cst_25 = arith.constant 0.000000e+00 : f32
    %70 = arith.select %69, %65, %cst_25 : f32
    %cst_26 = arith.constant 0.000000e+00 : f32
    %71 = arith.addf %cst_26, %70 : f32
    %72 = vector.extract_strided_slice %48 {offsets = [8, 8], sizes = [8, 8], strides = [1, 1]} : vector<32x32xf32> to vector<8x8xf32>
    %73 = arith.mulf %72, %72 : vector<8x8xf32>
    %74 = vector.shape_cast %73 : vector<8x8xf32> to vector<1x8x8xf32>
    %cst_27 = arith.constant dense<0.000000e+00> : vector<1xf32>
    %75 = vector.multi_reduction <add>, %74, %cst_27 [1, 2] : vector<1x8x8xf32> to vector<1xf32>
    %76 = vector.shape_cast %75 : vector<1xf32> to vector<1x1x1xf32>
    %77 = vector.extract %76[0, 0, 0] : f32 from vector<1x1x1xf32>
    %cst_28 = arith.constant 0.000000e+00 : f32
    %78 = vector.broadcast %cst_28 : f32 to vector<8x8xf32>
    %79 = arith.select %42, %72, %78 : vector<8x8xi1>, vector<8x8xf32>
    %80 = vector.shape_cast %79 : vector<8x8xf32> to vector<1x8x8xf32>
    %cst_29 = arith.constant dense<0.000000e+00> : vector<1xf32>
    %81 = vector.multi_reduction <add>, %80, %cst_29 [1, 2] : vector<1x8x8xf32> to vector<1xf32>
    %82 = vector.shape_cast %81 : vector<1xf32> to vector<1x1x1xf32>
    %83 = vector.extract %82[0, 0, 0] : f32 from vector<1x1x1xf32>
    %cst_30 = arith.constant 2.000000e+00 : f32
    %84 = arith.mulf %cst_30, %83 : f32
    %85 = arith.subf %77, %84 : f32
    %cst_31 = arith.constant 8.000000e+00 : f32
    %86 = arith.addf %85, %cst_31 : f32
    %cst_32 = arith.constant 0.000000e+00 : f32
    %87 = arith.maximumf %86, %cst_32 : f32
    %88 = math.sqrt %87 : f32
    %c4_i32_33 = arith.constant 4 : i32
    %89 = arith.muli %c0_i32, %c4_i32_33 : i32
    %90 = arith.addi %2, %89 : i32
    %c1_i32 = arith.constant 1 : i32
    %91 = arith.addi %90, %c1_i32 : i32
    %c4_i32_34 = arith.constant 4 : i32
    %92 = arith.cmpi slt, %91, %c4_i32_34 : i32
    %cst_35 = arith.constant 0.000000e+00 : f32
    %93 = arith.select %92, %88, %cst_35 : f32
    %94 = arith.addf %71, %93 : f32
    %95 = vector.extract_strided_slice %48 {offsets = [16, 16], sizes = [8, 8], strides = [1, 1]} : vector<32x32xf32> to vector<8x8xf32>
    %96 = arith.mulf %95, %95 : vector<8x8xf32>
    %97 = vector.shape_cast %96 : vector<8x8xf32> to vector<1x8x8xf32>
    %cst_36 = arith.constant dense<0.000000e+00> : vector<1xf32>
    %98 = vector.multi_reduction <add>, %97, %cst_36 [1, 2] : vector<1x8x8xf32> to vector<1xf32>
    %99 = vector.shape_cast %98 : vector<1xf32> to vector<1x1x1xf32>
    %100 = vector.extract %99[0, 0, 0] : f32 from vector<1x1x1xf32>
    %cst_37 = arith.constant 0.000000e+00 : f32
    %101 = vector.broadcast %cst_37 : f32 to vector<8x8xf32>
    %102 = arith.select %42, %95, %101 : vector<8x8xi1>, vector<8x8xf32>
    %103 = vector.shape_cast %102 : vector<8x8xf32> to vector<1x8x8xf32>
    %cst_38 = arith.constant dense<0.000000e+00> : vector<1xf32>
    %104 = vector.multi_reduction <add>, %103, %cst_38 [1, 2] : vector<1x8x8xf32> to vector<1xf32>
    %105 = vector.shape_cast %104 : vector<1xf32> to vector<1x1x1xf32>
    %106 = vector.extract %105[0, 0, 0] : f32 from vector<1x1x1xf32>
    %cst_39 = arith.constant 2.000000e+00 : f32
    %107 = arith.mulf %cst_39, %106 : f32
    %108 = arith.subf %100, %107 : f32
    %cst_40 = arith.constant 8.000000e+00 : f32
    %109 = arith.addf %108, %cst_40 : f32
    %cst_41 = arith.constant 0.000000e+00 : f32
    %110 = arith.maximumf %109, %cst_41 : f32
    %111 = math.sqrt %110 : f32
    %c4_i32_42 = arith.constant 4 : i32
    %112 = arith.muli %c0_i32, %c4_i32_42 : i32
    %113 = arith.addi %2, %112 : i32
    %c2_i32 = arith.constant 2 : i32
    %114 = arith.addi %113, %c2_i32 : i32
    %c4_i32_43 = arith.constant 4 : i32
    %115 = arith.cmpi slt, %114, %c4_i32_43 : i32
    %cst_44 = arith.constant 0.000000e+00 : f32
    %116 = arith.select %115, %111, %cst_44 : f32
    %117 = arith.addf %94, %116 : f32
    %118 = vector.extract_strided_slice %48 {offsets = [24, 24], sizes = [8, 8], strides = [1, 1]} : vector<32x32xf32> to vector<8x8xf32>
    %119 = arith.mulf %118, %118 : vector<8x8xf32>
    %120 = vector.shape_cast %119 : vector<8x8xf32> to vector<1x8x8xf32>
    %cst_45 = arith.constant dense<0.000000e+00> : vector<1xf32>
    %121 = vector.multi_reduction <add>, %120, %cst_45 [1, 2] : vector<1x8x8xf32> to vector<1xf32>
    %122 = vector.shape_cast %121 : vector<1xf32> to vector<1x1x1xf32>
    %123 = vector.extract %122[0, 0, 0] : f32 from vector<1x1x1xf32>
    %cst_46 = arith.constant 0.000000e+00 : f32
    %124 = vector.broadcast %cst_46 : f32 to vector<8x8xf32>
    %125 = arith.select %42, %118, %124 : vector<8x8xi1>, vector<8x8xf32>
    %126 = vector.shape_cast %125 : vector<8x8xf32> to vector<1x8x8xf32>
    %cst_47 = arith.constant dense<0.000000e+00> : vector<1xf32>
    %127 = vector.multi_reduction <add>, %126, %cst_47 [1, 2] : vector<1x8x8xf32> to vector<1xf32>
    %128 = vector.shape_cast %127 : vector<1xf32> to vector<1x1x1xf32>
    %129 = vector.extract %128[0, 0, 0] : f32 from vector<1x1x1xf32>
    %cst_48 = arith.constant 2.000000e+00 : f32
    %130 = arith.mulf %cst_48, %129 : f32
    %131 = arith.subf %123, %130 : f32
    %cst_49 = arith.constant 8.000000e+00 : f32
    %132 = arith.addf %131, %cst_49 : f32
    %cst_50 = arith.constant 0.000000e+00 : f32
    %133 = arith.maximumf %132, %cst_50 : f32
    %134 = math.sqrt %133 : f32
    %c4_i32_51 = arith.constant 4 : i32
    %135 = arith.muli %c0_i32, %c4_i32_51 : i32
    %136 = arith.addi %2, %135 : i32
    %c3_i32 = arith.constant 3 : i32
    %137 = arith.addi %136, %c3_i32 : i32
    %c4_i32_52 = arith.constant 4 : i32
    %138 = arith.cmpi slt, %137, %c4_i32_52 : i32
    %cst_53 = arith.constant 0.000000e+00 : f32
    %139 = arith.select %138, %134, %cst_53 : f32
    %140 = arith.addf %117, %139 : f32
    %141 = arith.addf %cst_13, %140 : f32
    %c1_i32_54 = arith.constant 1 : i32
    %142 = tpu.iota {dimensions = array<i32: 1>} : vector<8x128xi32>
    %c0_i32_55 = arith.constant 0 : i32
    %143 = vector.broadcast %c0_i32_55 : i32 to vector<8x128xi32>
    %144 = arith.cmpi eq, %142, %143 : vector<8x128xi32>
    %cst_56 = arith.constant 0.000000e+00 : f32
    %145 = vector.broadcast %39 : f32 to vector<8x128xf32>
    %146 = vector.broadcast %cst_56 : f32 to vector<8x128xf32>
    %147 = arith.select %144, %145, %146 : vector<8x128xi1>, vector<8x128xf32>
    %c1_i32_57 = arith.constant 1 : i32
    %148 = vector.broadcast %c1_i32_57 : i32 to vector<8x128xi32>
    %149 = arith.cmpi eq, %142, %148 : vector<8x128xi32>
    %cst_58 = arith.constant 0.000000e+00 : f32
    %150 = vector.broadcast %141 : f32 to vector<8x128xf32>
    %151 = vector.broadcast %cst_58 : f32 to vector<8x128xf32>
    %152 = arith.select %149, %150, %151 : vector<8x128xi1>, vector<8x128xf32>
    %153 = arith.addf %147, %152 : vector<8x128xf32>
    %c0_59 = arith.constant 0 : index
    %c0_60 = arith.constant 0 : index
    %154 = vector.load %arg4[%c0_59, %c0_60] : memref<8x128xf32, #tpu.memory_space<vmem>>, vector<8x128xf32>
    tpu.vector_store %arg4[%c0_59, %c0_60], %153 {strides = array<i32>} : memref<8x128xf32, #tpu.memory_space<vmem>>, vector<8x128xf32>,
    return
  }
  func.func @transform_0(%arg0: i32) -> (i32, i32) {
    %c0_i32 = arith.constant 0 : i32
    %c0_i32_0 = arith.constant 0 : i32
    return %arg0, %c0_i32 : i32, i32
  }
  func.func @transform_1(%arg0: i32) -> (i32, i32) {
    %c0_i32 = arith.constant 0 : i32
    %c0_i32_0 = arith.constant 0 : i32
    return %arg0, %c0_i32 : i32, i32
  }
  func.func @transform_2(%arg0: i32) -> (i32, i32) {
    %c0_i32 = arith.constant 0 : i32
    %c0_i32_0 = arith.constant 0 : i32
    return %arg0, %c0_i32 : i32, i32
  }
  func.func @transform_3(%arg0: i32) -> (i32, i32) {
    %c0_i32 = arith.constant 0 : i32
    %c0_i32_0 = arith.constant 0 : i32
    return %arg0, %c0_i32 : i32, i32
  }
}

</mosaic_0001>

<bundles_post_ra>
// kernel: tpu_custom_call.1
= control target key start
LH: loop header
LB: loop body
LE: loop exit
PB: predicated region body
PF: predicated region fallthrough
CT: control target
= control target key end

     0   :  { %vm24_vm0 = vcmask 60416   ;;  %s527_s0 = inlined_call_operand.vmem [shape: f32[4,8], index: 0, kind: input, shape index: {}]   ;;  %s528_s1 = inlined_call_operand.vmem [shape: s32[4,1], index: 1, kind: input, shape index: {}]   ;;  %s529_s2 = inlined_call_operand.vmem [shape: f32[32,8], index: 2, kind: input, shape index: {}]   ;;  %s530_s3 = inlined_call_operand.hbm [shape: f32[8,128], index: 3, kind: output, shape index: {}]  }
   0x1   :  { %v16_v0 = vld [vmem:[%s527_s0] sm:$0xf] }
   0x2   :  { %8 = vsyncpa [#allocation3], 0  ;;  %v25_v1 = vsel %vm24_vm0, %v16_v0, -inf  ;;  %v69_v2 = vld [vmem:[%s529_s2 + $0x10] sm:$0xff]  ;;  %v70_v3 = vld [vmem:[%s529_s2 + $0x18] sm:$0xff]  ;;  %vm73_vm1 = vcmask 64512   ;;  %v19_v18 = vlaneseq }
   0x3   :  { %26 = vmax.xlane.f32.xlu0 %v25_v1  ;;  %v17_v4 = vld [vmem:[%s528_s1] sm:$0xf]  ;;  %v72_v5 = vpack.c.bf16 %v70_v3, %v69_v2  ;;  %v415_v6 = vmov 0   ;;  %v68_v8 = vld [vmem:[%s529_s2 + $0x8] sm:$0xff]  ;;  %s416_s1 = smov 120   ;;  %vm55_vm5 = vcmask 3072  }
   0x4   :  { %379 = vset.pattern.permute.xlu1 %v415_v6  ;;  %v67_v7 = vld [vmem:[%s529_s2] sm:$0xff]  ;;  %380 = vset.pattern.permute.xlu0 %v415_v6  ;;  %v467_v19 = vand.u32 127, %v19_v18  ;;  %v471_v24 = vshrl.u32 %v19_v18, 7  ;;  %s417_s2 = smov 112   ;;  %s418_s29 = smov 0.0  }
   0x5   :  { %40 = vperm.xlu1 %379, %v17_v4   ;;  %v71_v9 = vpack.c.bf16 %v68_v8, %v67_v7  ;;  %345 = vmatprep.subr.msk.bf16.mxu0 %vm73_vm1, %v72_v5  ;;  %v78_v10 = vsel %vm73_vm1, %v72_v5, 0  ;;  %s419_s4 = smov 104  }
   0x6   :  { %338 = vmatpush3.bf16.xpose.msra.mxu0 %v78_v10  ;;  %vm66_vm3 = vcmp.eq.s32.totalorder %v471_v24, %v467_v19  ;;  %vm23_vm4 = vcmp.lt.s32.totalorder %v471_v24, 4  ;;  %vm309_vm14 = vcmp.eq.s32.totalorder %v467_v19, 0  ;;  %vm312_vm15 = vcmp.eq.s32.totalorder %v467_v19, 1 }
   0x7   :  { %341 = vmatprep.mubr.msk.bf16.mxu0 %vm73_vm1, %v71_v9  ;;  %346 = vmatprep.subr.msk.bf16.mxu0 %vm73_vm1, %v71_v9  ;;  %v75_v11 = vsel %vm73_vm1, %v71_v9, 0 }
   0xe   :  { %340 = vmatpush3.bf16.xpose.msra.mxu0 %v75_v11 }
  0x15   :  { %342 = vmatmul.mubr.msk.bf16.vlgmr.msra.gmra.mxu0 %vm73_vm1, %v72_v5 }
  0x80   :  { %v41_v21 = vpop.permute.xlu1 %40 }
  0x81   :  { %vm42_vm2 = vcmp.eq.s32.totalorder %v467_v19, %v41_v21 }
  0x8c   :  { %v27_v12 = vpop.xlane.xlu0 %26 }
  0x8d   :  { %v28_v13 = vsub.f32 %v16_v0, %v27_v12 }
  0x8f   :  { %v29_v14 = vmul.f32 1.442695, %v28_v13 }
  0x91   :  { %381 = vpow2.f32 %v29_v14 }
  0x9e   :  { %v382_v15 = vpop.eup %381 }
  0x9f   :  { %v31_v16 = vsel %vm24_vm0, %v382_v15, 0.0 }
  0xa0   :  { %32 = vadd.xlane.f32.xlu0 %v31_v16 }
  0xd5   :  { %v469_v20 = vpop.f32.mrf.mxu0 }
  0xd6   :  { %v214_v7 = vmul.f32 %v469_v20, %v469_v20 }
  0xd7   :  { %v114_v25 = vpop.f32.mrf.mxu0 }
  0xd8   :  { %v129_v27 = vmul.f32 %v114_v25, %v114_v25  ;;  %v140_v32 = vsel %vm66_vm3, %v114_v25, 0.0 }
  0xd9   :  { %v141_v33 = vsel %vm73_vm1, %v140_v32, 0.0  ;;  %v483_v34 = vpop.f32.mrf.mxu0 }
  0xda   :  { %v130_v31 = vsel %vm73_vm1, %v129_v27, 0.0  ;;  %v261_v15 = vmul.f32 %v483_v34, %v483_v34 }
  0xdb   :  { %v117_v35 = vpop.f32.mrf.mxu0 }
  0xdc   :  { %v167_v36 = vmul.f32 %v117_v35, %v117_v35 }
 0x129   :  { %v33_v17 = vpop.xlane.xlu0 %32 }
 0x12a   :  { %383 = vlog2.f32 %v33_v17 }
 0x137   :  { %v384_v22 = vpop.eup %383 }
 0x138   :  { %v35_v23 = vmul.f32 0.6931472, %v384_v22 }
 0x13a   :  { %v36_v26 = vsub.f32 %v28_v13, %v35_v23 }
 0x13c   :  { %v47_v28 = vsel %vm24_vm0, %v36_v26, 0.0  ;;  %v43_v29 = vsel %vm42_vm2, %v36_v26, 0.0 }
 0x13d   :  { %48 = vadd.xlane.f32.xlu0 %v47_v28  ;;  %v44_v30 = vsel %vm24_vm0, %v43_v29, 0.0 }
 0x13e   :  { %45 = vadd.xlane.f32.xlu1 %v44_v30 }
 0x141   :  { %131 = vadd.xlane.f32.xlu0 %v130_v31 }
 0x145   :  { %142 = vadd.xlane.f32.xlu0 %v141_v33 }
 0x14f   :  { %169 = vrot.lane.b32.xlu1 %v167_v36, %s416_s1 }
 0x1c6   :  { %v49_v37 = vpop.xlane.xlu0 %48 }
 0x1c7   :  { %v51_v38 = vmul.f32 0.028571429, %v49_v37  ;;  %v46_v39 = vpop.xlane.xlu1 %45 }
 0x1c8   :  { %v50_v40 = vmul.f32 0.7714286, %v46_v39 }
 0x1ca   :  { %v52_v41 = vadd.f32 %v51_v38, %v50_v40  ;;  %v132_v47 = vpop.xlane.xlu0 %131 }
 0x1cb   :  { %v170_v45 = vpop.permute.xlu1 %169  ;;  %v133_v49 = vrot.slane %v132_v47, 4 }
 0x1cc   :  { %v53_v42 = vsub.f32 0.0, %v52_v41  ;;  %v172_v46 = vsel %vm73_vm1, %v170_v45, 0.0 }
 0x1cd   :  { %v134_v51 = vadd.f32 %v133_v49, %v132_v47 }
 0x1ce   :  { %v54_v43 = vsel %vm23_vm4, %v53_v42, 0.0  ;;  %v143_v48 = vpop.xlane.xlu0 %142 }
 0x1cf   :  { %v56_v44 = vsel %vm55_vm5, %v54_v43, 0.0  ;;  %v144_v50 = vrot.slane %v143_v48, 4  ;;  %v135_v53 = vrot.slane %v134_v51, 2 }
 0x1d0   :  { %57 = vadd.xlane.f32.xlu0 %v56_v44 }
 0x1d1   :  { %v145_v52 = vadd.f32 %v144_v50, %v143_v48  ;;  %v136_v59 = vadd.f32 %v135_v53, %v134_v51 }
 0x1d3   :  { %v146_v55 = vrot.slane %v145_v52, 2  ;;  %v137_v1 = vrot.slane %v136_v59, 1 }
 0x1d5   :  { %v147_v62 = vadd.f32 %v146_v55, %v145_v52  ;;  %v138_v5 = vadd.f32 %v137_v1, %v136_v59 }
 0x1d7   :  { %v148_v3 = vrot.slane %v147_v62, 1 }
 0x1d9   :  { %v149_v6 = vadd.f32 %v148_v3, %v147_v62 }
 0x1e6   :  { %183 = vrot.lane.b32.xlu0 %v117_v35, %s416_s1 }
 0x205   :  { %173 = vadd.xlane.f32.xlu0 %v172_v46 }
 0x21b   :  { %230 = vrot.lane.b32.xlu0 %v469_v20, %s417_s2 }
 0x259   :  { %v58_v54 = vpop.xlane.xlu0 %57 }
 0x25a   :  { %v59_v56 = vrot.slane %v58_v54, 4 }
 0x25c   :  { %v60_v57 = vadd.f32 %v59_v56, %v58_v54 }
 0x25d   :  { %v184_v58 = vpop.permute.xlu0 %183 }
 0x25e   :  { %v61_v60 = vrot.slane %v60_v57, 2  ;;  %v186_v61 = vsel %vm66_vm3, %v184_v58, 0.0 }
 0x25f   :  { %v187_v63 = vsel %vm73_vm1, %v186_v61, 0.0 }
 0x260   :  { %188 = vadd.xlane.f32.xlu1 %v187_v63  ;;  %v62_v0 = vadd.f32 %v61_v60, %v60_v57 }
 0x262   :  { %v63_v2 = vrot.slane %v62_v0, 1 }
 0x264   :  { %v64_v4 = vadd.f32 %v63_v2, %v62_v0 }
 0x266   :  { %347 = vpush %v64_v4 }
 0x267   :  { %349 = vpush %v138_v5 }
 0x268   :  { %351 = vpush %v149_v6 }
 0x271   :  { %216 = vrot.lane.b32.xlu1 %v214_v7, %s417_s2 }
 0x28e   :  { %v174_v8 = vpop.xlane.xlu0 %173 }
 0x28f   :  { %v175_v12 = vrot.slane %v174_v8, 4 }
 0x291   :  { %v176_v13 = vadd.f32 %v175_v12, %v174_v8 }
 0x292   :  { %v231_v9 = vpop.permute.xlu0 %230 }
 0x293   :  { %v233_v10 = vsel %vm66_vm3, %v231_v9, 0.0  ;;  %v177_v16 = vrot.slane %v176_v13, 2 }
 0x294   :  { %v234_v11 = vsel %vm73_vm1, %v233_v10, 0.0 }
 0x295   :  { %235 = vadd.xlane.f32.xlu1 %v234_v11  ;;  %v178_v17 = vadd.f32 %v177_v16, %v176_v13 }
 0x297   :  { %s500_s23 = spop %347  ;;  %v179_v18 = vrot.slane %v178_v17, 1 }
 0x298   :  { %s350_s24 = spop %349 }
 0x299   :  { %s352_s25 = spop %351  ;;  %v180_v23 = vadd.f32 %v179_v18, %v178_v17 }
 0x29a   :  { %s151_s26 = smul.f32 2.0, %s352_s25 }
 0x29c   :  { %s152_s27 = ssub.f32 %s350_s24, %s151_s26 }
 0x29e   :  { %s153_s28 = sadd.f32 8.0, %s152_s27 }
 0x2a0   :  { %s154_s30 = smax.f32 %s418_s29, %s153_s28  ;;  %s420_s28 = smov [#allocation2]  }
 0x2a1   :  { %v155_v14 = vstv %s154_s30 }
 0x2a2   :  { %385 = vrsqrt.f32 %v155_v14  ;;  %vm158_vm6 = vcmp.eq.f32.partialorder %v155_v14, inf  ;;  %v161_v22 = vand.u32 2147483648, %v155_v14  ;;  %vm160_vm7 = vcmp.eq.f32.partialorder %v155_v14, 0.0 }
 0x2a6   :  { %263 = vrot.lane.b32.xlu1 %v261_v15, %s419_s4 }
 0x2af   :  { %v386_v20 = vpop.eup %385 }
 0x2b0   :  { %v157_v21 = vmul.f32 %v386_v20, %v155_v14 }
 0x2b2   :  { %v159_v25 = vsel %vm158_vm6, %v155_v14, %v157_v21 }
 0x2b3   :  { %v162_v26 = vsel %vm160_vm7, %v161_v22, %v159_v25 }
 0x2b4   :  { %353 = vpush %v162_v26 }
 0x2b5   :  { %355 = vpush %v180_v23  ;;  %v310_v23 = vstv %s500_s23 }
 0x2b6   :  { %v311_v26 = vsel %vm309_vm14, %v310_v23, 0.0 }
 0x2e5   :  { %s508_s5 = spop %353 }
 0x2e6   :  { %s356_s6 = spop %355 }
 0x2e9   :  { %v189_v27 = vpop.xlane.xlu1 %188 }
 0x2ea   :  { %v190_v28 = vrot.slane %v189_v27, 4 }
 0x2ec   :  { %v191_v29 = vadd.f32 %v190_v28, %v189_v27 }
 0x2ed   :  { %v217_v30 = vpop.permute.xlu1 %216 }
 0x2ee   :  { %v192_v31 = vrot.slane %v191_v29, 2  ;;  %v219_v32 = vsel %vm73_vm1, %v217_v30, 0.0 }
 0x2ef   :  { %220 = vadd.xlane.f32.xlu0 %v219_v32 }
 0x2f0   :  { %v193_v33 = vadd.f32 %v192_v31, %v191_v29 }
 0x2f2   :  { %v194_v35 = vrot.slane %v193_v33, 1 }
 0x2f4   :  { %v195_v36 = vadd.f32 %v194_v35, %v193_v33 }
 0x2f6   :  { %357 = vpush %v195_v36 }
 0x305   :  { %277 = vrot.lane.b32.xlu0 %v483_v34, %s419_s4 }
 0x31e   :  { %v236_v37 = vpop.xlane.xlu1 %235 }
 0x31f   :  { %v237_v45 = vrot.slane %v236_v37, 4 }
 0x321   :  { %v238_v46 = vadd.f32 %v237_v45, %v236_v37 }
 0x322   :  { %v264_v38 = vpop.permute.xlu1 %263 }
 0x323   :  { %v266_v39 = vsel %vm73_vm1, %v264_v38, 0.0  ;;  %v239_v47 = vrot.slane %v238_v46, 2 }
 0x324   :  { %267 = vadd.xlane.f32.xlu0 %v266_v39 }
 0x325   :  { %v240_v52 = vadd.f32 %v239_v47, %v238_v46 }
 0x327   :  { %s358_s7 = spop %357  ;;  %v241_v57 = vrot.slane %v240_v52, 1 }
 0x328   :  { %s197_s8 = smul.f32 2.0, %s358_s7 }
 0x329   :  { %v242_v60 = vadd.f32 %v241_v57, %v240_v52 }
 0x32a   :  { %s198_s9 = ssub.f32 %s356_s6, %s197_s8 }
 0x32c   :  { %s199_s10 = sadd.f32 8.0, %s198_s9 }
 0x32e   :  { %s200_s11 = smax.f32 %s418_s29, %s199_s10 }
 0x32f   :  { %v201_v40 = vstv %s200_s11 }
 0x330   :  { %387 = vrsqrt.f32 %v201_v40  ;;  %vm204_vm8 = vcmp.eq.f32.partialorder %v201_v40, inf  ;;  %v207_v34 = vand.u32 2147483648, %v201_v40  ;;  %vm206_vm9 = vcmp.eq.f32.partialorder %v201_v40, 0.0 }
 0x33d   :  { %v388_v41 = vpop.eup %387 }
 0x33e   :  { %v203_v42 = vmul.f32 %v388_v41, %v201_v40 }
 0x340   :  { %v205_v43 = vsel %vm204_vm8, %v201_v40, %v203_v42 }
 0x341   :  { %v208_v44 = vsel %vm206_vm9, %v207_v34, %v205_v43 }
 0x342   :  { %359 = vpush %v208_v44 }
 0x373   :  { %s515_s12 = spop %359 }
 0x374   :  { %s213_s24 = sadd.f32 %s515_s12, %s508_s5 }
 0x378   :  { %v221_v48 = vpop.xlane.xlu0 %220 }
 0x379   :  { %v222_v49 = vrot.slane %v221_v48, 4 }
 0x37b   :  { %v223_v50 = vadd.f32 %v222_v49, %v221_v48 }
 0x37c   :  { %v278_v51 = vpop.permute.xlu0 %277 }
 0x37d   :  { %v224_v53 = vrot.slane %v223_v50, 2  ;;  %v280_v54 = vsel %vm66_vm3, %v278_v51, 0.0 }
 0x37e   :  { %v281_v55 = vsel %vm73_vm1, %v280_v54, 0.0 }
 0x37f   :  { %282 = vadd.xlane.f32.xlu1 %v281_v55  ;;  %v225_v56 = vadd.f32 %v224_v53, %v223_v50 }
 0x381   :  { %v226_v58 = vrot.slane %v225_v56, 1 }
 0x383   :  { %v227_v59 = vadd.f32 %v226_v58, %v225_v56 }
 0x385   :  { %361 = vpush %v227_v59 }
 0x386   :  { %363 = vpush %v242_v60 }
 0x3ad   :  { %v268_v61 = vpop.xlane.xlu0 %267 }
 0x3ae   :  { %v269_v24 = vrot.slane %v268_v61, 4 }
 0x3b0   :  { %v270_v63 = vadd.f32 %v269_v24, %v268_v61 }
 0x3b2   :  { %v271_v0 = vrot.slane %v270_v63, 2 }
 0x3b4   :  { %v272_v1 = vadd.f32 %v271_v0, %v270_v63 }
 0x3b6   :  { %s362_s13 = spop %361  ;;  %v273_v3 = vrot.slane %v272_v1, 1 }
 0x3b7   :  { %s364_s14 = spop %363 }
 0x3b8   :  { %s244_s15 = smul.f32 2.0, %s364_s14  ;;  %v274_v8 = vadd.f32 %v273_v3, %v272_v1 }
 0x3ba   :  { %s245_s16 = ssub.f32 %s362_s13, %s244_s15 }
 0x3bc   :  { %s246_s17 = sadd.f32 8.0, %s245_s16 }
 0x3be   :  { %s247_s18 = smax.f32 %s418_s29, %s246_s17 }
 0x3bf   :  { %v248_v62 = vstv %s247_s18 }
 0x3c0   :  { %389 = vrsqrt.f32 %v248_v62  ;;  %vm251_vm10 = vcmp.eq.f32.partialorder %v248_v62, inf  ;;  %v254_v5 = vand.u32 2147483648, %v248_v62  ;;  %vm253_vm11 = vcmp.eq.f32.partialorder %v248_v62, 0.0 }
 0x3cd   :  { %v390_v2 = vpop.eup %389 }
 0x3ce   :  { %v250_v4 = vmul.f32 %v390_v2, %v248_v62 }
 0x3d0   :  { %v252_v6 = vsel %vm251_vm10, %v248_v62, %v250_v4 }
 0x3d1   :  { %v255_v7 = vsel %vm253_vm11, %v254_v5, %v252_v6 }
 0x3d2   :  { %365 = vpush %v255_v7 }
 0x3d3   :  { %367 = vpush %v274_v8 }
 0x403   :  { %s366_s19 = spop %365 }
 0x404   :  { %s368_s0 = spop %367  ;;  %s260_s25 = sadd.f32 %s366_s19, %s213_s24 }
 0x408   :  { %v283_v9 = vpop.xlane.xlu1 %282 }
 0x409   :  { %v284_v10 = vrot.slane %v283_v9, 4 }
 0x40b   :  { %v285_v11 = vadd.f32 %v284_v10, %v283_v9 }
 0x40d   :  { %v286_v12 = vrot.slane %v285_v11, 2 }
 0x40f   :  { %v287_v13 = vadd.f32 %v286_v12, %v285_v11 }
 0x411   :  { %v288_v14 = vrot.slane %v287_v13, 1 }
 0x413   :  { %v289_v15 = vadd.f32 %v288_v14, %v287_v13 }
 0x415   :  { %369 = vpush %v289_v15 }
 0x446   :  { %s370_s20 = spop %369 }
 0x447   :  { %s291_s21 = smul.f32 2.0, %s370_s20 }
 0x449   :  { %s292_s22 = ssub.f32 %s368_s0, %s291_s21 }
 0x44b   :  { %s293_s1 = sadd.f32 8.0, %s292_s22 }
 0x44d   :  { %s294_s2 = smax.f32 %s418_s29, %s293_s1  ;;  %s323_s29 = sshll.u32 %s420_s28, 4  ;;  %s324_s29 = int_to_ptr.vmem [resolvable:$true] %s323_s29 }
 0x44e   :  { %v295_v16 = vstv %s294_s2  ;;  %s393_s30 = scalar_lea.vmem %s324_s29, 128  ;;  %p398_p1 = scmp.lt.s32.totalorder %s324_s29, %s324_s29 }
 0x44f   :  { %391 = vrsqrt.f32 %v295_v16  ;;  %vm298_vm12 = vcmp.eq.f32.partialorder %v295_v16, inf  ;;  %v301_v20 = vand.u32 2147483648, %v295_v16  ;;  %vm300_vm13 = vcmp.eq.f32.partialorder %v295_v16, 0.0  ;;  %p394_p0 = scmp.ne.s32.totalorder %s324_s29, %s393_s30  ;;  %p399_p2 = scmp.lt.s32.totalorder %s393_s30, %s393_s30 }
 0x451   :  { %p400_p3 = por %p399_p2, %p398_p1 }
 0x453   :  { %p401_p4 = pnand %p400_p3, %p394_p0 }
 0x45c   :  { %v392_v17 = vpop.eup %391 }
 0x45d   :  { %v297_v18 = vmul.f32 %v392_v17, %v295_v16 }
 0x45f   :  { %v299_v21 = vsel %vm298_vm12, %v295_v16, %v297_v18 }
 0x460   :  { %v302_v22 = vsel %vm300_vm13, %v301_v20, %v299_v21 }
 0x461   :  { %371 = vpush %v302_v22 }
 0x492   :  { %s372_s26 = spop %371 }
 0x493   :  { %s307_s27 = sadd.f32 %s372_s26, %s260_s25 }
 0x495   :  { %v313_v25 = vstv %s307_s27 }
 0x496   :  { %v314_v27 = vsel %vm312_vm15, %v313_v25, 0.0 }
 0x497   :  { %v315_v28 = vadd.f32 %v314_v27, %v311_v26 }
 0x499   :  { %316 = vst [vmem:[#allocation2] sm:$0xff] %v315_v28 }
 0x49a   :  { %404 = shalt.err (!%p401_p4)
}
 0x49b   :  { %326 = dma.vmem_to_hbm [thread:$0]  %s324_s29, 128, %s530_s3, [#allocation3]  }
 0x49c   :  { %413 = dma.done.wait [#allocation3], 128  }
 0x49d   :  { %414 = vsyncadd [#allocation3], 4294967168 }
 0x49e   :  { %330 = vsyncpa [#allocation3], 1 }

</bundles_post_ra>
